<compile_context>
chip_gen: v7x
topology: tpu7x:2x2x1
jax: 0.10.0
libtpu: 0.0.40
codegen_flags: <defaults>
</compile_context>

<pallas_src>
import jax
import jax.numpy as jnp
from jax.experimental import pallas as pl
from jax.experimental.pallas import tpu as pltpu

FEAT_DIM = 128           # stand-in for the backbone feature width (1280 for efficientnet)
NUM_CLASSES = 4
OUT_W = 128              # lane-dense padded output width (unmasked vst)
VAR_COL = NUM_CLASSES        # col 4: softplus(variance_pre)
VPRE_COL = NUM_CLASSES + 1   # col 5: variance_pre (duplicated variance weights)
SUBLANE = 8


def _round_up(x, m):
    return ((x + m - 1) // m) * m


def aleatoric_kernel(x_ref, wb_ref, bb_ref, wh_ref, bh_ref, out_ref):
    # --- fused global-average-pool over H*W ------------------------------------
    pooled = jnp.mean(x_ref[...], axis=-1)                            # (TB, C)

    # --- backbone stand-in: Linear(C -> F) + ReLU (classifier[-1] == Identity) --
    feat = jnp.dot(pooled, wb_ref[...],
                   preferred_element_type=jnp.float32) + bb_ref[...]
    feat = jnp.maximum(feat, 0.0)                                     # (TB, F)

    # --- fused heads: one lane-dense (F, 128) matmul ---------------------------
    # columns: 0..3 logits | 4 variance | 5 variance (dup) | 6..127 zero
    y = jnp.dot(feat, wh_ref[...],
                preferred_element_type=jnp.float32) + bh_ref[...]     # (TB, 128)

    # torch.nn.Softplus(beta=1, threshold=20): x if x > 20 else log(1 + exp(x))
    sp = jnp.where(y > 20.0, y, jnp.logaddexp(0.0, y))

    # single lane-dense slab: [logits(4) | variance | variance_pre | zeros...]
    col = jax.lax.broadcasted_iota(jnp.int32, y.shape, 1)
    out_ref[...] = jnp.where(col == VAR_COL, sp, y)


def init_params(key, in_channels):
    kb, kbb, kl, klb, kv, kvb = jax.random.split(key, 6)
    # backbone stand-in Linear(C -> F)
    wb = jax.random.normal(kb, (in_channels, FEAT_DIM), jnp.float32) * 0.1
    bb = jax.random.normal(kbb, (1, FEAT_DIM), jnp.float32) * 0.01
    # logits_layer: Linear(F, 4); variance_layer: Linear(F, 1)
    w_logits = jax.random.normal(kl, (FEAT_DIM, NUM_CLASSES), jnp.float32) * 0.05
    b_logits = jax.random.normal(klb, (NUM_CLASSES,), jnp.float32) * 0.01
    w_var = jax.random.normal(kv, (FEAT_DIM, 1), jnp.float32) * 0.05
    b_var = jax.random.normal(kvb, (1,), jnp.float32) * 0.01

    # fuse heads column-wise and pad to a lane-dense width; duplicate the
    # variance column so variance_pre lands at col 5 with no in-kernel shuffle.
    wh = jnp.zeros((FEAT_DIM, OUT_W), jnp.float32)
    wh = wh.at[:, :NUM_CLASSES].set(w_logits)
    wh = wh.at[:, VAR_COL].set(w_var[:, 0])
    wh = wh.at[:, VPRE_COL].set(w_var[:, 0])
    bh = jnp.zeros((1, OUT_W), jnp.float32)
    bh = bh.at[0, :NUM_CLASSES].set(b_logits)
    bh = bh.at[0, VAR_COL].set(b_var[0])
    bh = bh.at[0, VPRE_COL].set(b_var[0])
    return wb, bb, wh, bh


def aleatoric_forward(x, params):
    """x: (B, C, H, W) float32 NCHW. Returns (logit_variance, logits, variance, variance_pre)."""
    wb, bb, wh, bh = params
    B, C, H, W = x.shape
    HW = H * W
    x_flat = x.reshape(B, C, HW)

    # pad batch to a multiple of the tile (sublane-aligned) so vregs aren't wasted
    TB = 128 if B > 128 else _round_up(max(B, 1), SUBLANE)
    B_pad = _round_up(B, TB)
    if B_pad != B:
        x_flat = jnp.pad(x_flat, ((0, B_pad - B), (0, 0), (0, 0)))

    out = pl.pallas_call(
        aleatoric_kernel,
        out_shape=jax.ShapeDtypeStruct((B_pad, OUT_W), jnp.float32),
        grid_spec=pltpu.PrefetchScalarGridSpec(
            num_scalar_prefetch=0,
            grid=(B_pad // TB,),
            in_specs=[
                pl.BlockSpec((TB, C, HW), lambda i: (i, 0, 0)),
                pl.BlockSpec((C, FEAT_DIM), lambda i: (0, 0)),
                pl.BlockSpec((1, FEAT_DIM), lambda i: (0, 0)),
                pl.BlockSpec((FEAT_DIM, OUT_W), lambda i: (0, 0)),
                pl.BlockSpec((1, OUT_W), lambda i: (0, 0)),
            ],
            out_specs=pl.BlockSpec((TB, OUT_W), lambda i: (i, 0)),
        ),
        compiler_params=pltpu.CompilerParams(
            dimension_semantics=("parallel",)),
    )(x_flat, wb, bb, wh, bh)

    # cheap wrapper slices of the single slab — the kernel writes one dense buffer
    out = out[:B]
    logits = out[:, :NUM_CLASSES]
    variance = out[:, VAR_COL:VAR_COL + 1]
    variance_pre = out[:, VPRE_COL:VPRE_COL + 1]
    logit_variance = out[:, :NUM_CLASSES + 1]
    return logit_variance, logits, variance, variance_pre


if __name__ == "__main__":
    key = jax.random.PRNGKey(0)
    kx, kp = jax.random.split(key)

    B, C, H, W = 2, 4, 16, 16
    x = jax.random.normal(kx, (B, C, H, W), jnp.float32)
    params = init_params(kp, C)

    outs = jax.jit(aleatoric_forward)(x, params)
    outs = jax.block_until_ready(outs)
    logit_variance, logits, variance, variance_pre = outs

    # pure-JAX reference of the same math
    wb, bb, wh, bh = params
    pooled = jnp.mean(x, axis=(2, 3))
    feat = jnp.maximum(pooled @ wb + bb, 0.0)
    logits_ref = feat @ wh[:, :NUM_CLASSES] + bh[0, :NUM_CLASSES]
    vpre_ref = feat @ wh[:, VPRE_COL:VPRE_COL + 1] + bh[0, VPRE_COL]
    var_ref = jax.nn.softplus(vpre_ref)

    assert logit_variance.shape == (B, NUM_CLASSES + 1)
    assert logits.shape == (B, NUM_CLASSES)
    assert variance.shape == (B, 1) and variance_pre.shape == (B, 1)
    assert jnp.allclose(logits, logits_ref, atol=1e-5)
    assert jnp.allclose(variance_pre, vpre_ref, atol=1e-5)
    assert jnp.allclose(variance, var_ref, atol=1e-5)
    assert jnp.allclose(logit_variance,
                        jnp.concatenate([logits_ref, var_ref], axis=1), atol=1e-5)

    print("KERNEL_OK")
</pallas_src>

<mosaic_0001>
module attributes {stable_mosaic.version = 11 : i64} {
  func.func @aleatoric_kernel(%arg0: i32, %arg1: memref<8x4x256xf32, #tpu.memory_space<vmem>>, %arg2: memref<4x128xf32, #tpu.memory_space<vmem>>, %arg3: memref<1x128xf32, #tpu.memory_space<vmem>>, %arg4: memref<128x128xf32, #tpu.memory_space<vmem>>, %arg5: memref<1x128xf32, #tpu.memory_space<vmem>>, %arg6: memref<8x128xf32, #tpu.memory_space<vmem>>) attributes {dimension_semantics = [#tpu.dimension_semantics<parallel>], iteration_bounds = array<i64: 1>, scalar_prefetch = 0 : i64, scratch_operands = 0 : i64, tpu.core_type = #tpu.core_type<tc>, window_params = [{transform_indices = @transform_0, window_bounds = array<i64: 8, 4, 256>}, {pipeline_mode = #tpu.pipeline_mode<synchronous>, transform_indices = @transform_1, window_bounds = array<i64: 4, 128>}, {pipeline_mode = #tpu.pipeline_mode<synchronous>, transform_indices = @transform_2, window_bounds = array<i64: 1, 128>}, {pipeline_mode = #tpu.pipeline_mode<synchronous>, transform_indices = @transform_3, window_bounds = array<i64: 128, 128>}, {pipeline_mode = #tpu.pipeline_mode<synchronous>, transform_indices = @transform_4, window_bounds = array<i64: 1, 128>}, {transform_indices = @transform_5, window_bounds = array<i64: 8, 128>}]} {
    %c0 = arith.constant 0 : index
    %c0_0 = arith.constant 0 : index
    %c0_1 = arith.constant 0 : index
    %0 = vector.load %arg1[%c0, %c0_0, %c0_1] : memref<8x4x256xf32, #tpu.memory_space<vmem>>, vector<8x4x256xf32>
    %cst = arith.constant dense<0.000000e+00> : vector<8x4xf32>
    %1 = vector.multi_reduction <add>, %0, %cst [2] : vector<8x4x256xf32> to vector<8x4xf32>
    %cst_2 = arith.constant 2.560000e+02 : f32
    %2 = vector.broadcast %cst_2 : f32 to vector<8x4xf32>
    %3 = arith.divf %1, %2 : vector<8x4xf32>
    %c0_3 = arith.constant 0 : index
    %c0_4 = arith.constant 0 : index
    %4 = vector.load %arg2[%c0_3, %c0_4] : memref<4x128xf32, #tpu.memory_space<vmem>>, vector<4x128xf32>
    %cst_5 = arith.constant dense<0.000000e+00> : vector<8x128xf32>
    %5 = tpu.matmul %3, %4, %cst_5 {dimension_numbers = #tpu.dot_dimension_numbers<[1], [0], [0], [1], [0, 0, 1, 1], [], []>} : vector<8x4xf32>, vector<4x128xf32>, vector<8x128xf32> -> vector<8x128xf32>
    %c0_6 = arith.constant 0 : index
    %c0_7 = arith.constant 0 : index
    %6 = vector.load %arg3[%c0_6, %c0_7] : memref<1x128xf32, #tpu.memory_space<vmem>>, vector<1x128xf32>
    %7 = vector.broadcast %6 : vector<1x128xf32> to vector<8x128xf32>
    %8 = arith.addf %5, %7 : vector<8x128xf32>
    %cst_8 = arith.constant 0.000000e+00 : f32
    %9 = vector.broadcast %cst_8 : f32 to vector<8x128xf32>
    %10 = arith.maximumf %8, %9 : vector<8x128xf32>
    %c0_9 = arith.constant 0 : index
    %c0_10 = arith.constant 0 : index
    %11 = vector.load %arg4[%c0_9, %c0_10] : memref<128x128xf32, #tpu.memory_space<vmem>>, vector<128x128xf32>
    %cst_11 = arith.constant dense<0.000000e+00> : vector<8x128xf32>
    %12 = tpu.matmul %10, %11, %cst_11 {dimension_numbers = #tpu.dot_dimension_numbers<[1], [0], [0], [1], [0, 0, 1, 1], [], []>} : vector<8x128xf32>, vector<128x128xf32>, vector<8x128xf32> -> vector<8x128xf32>
    %c0_12 = arith.constant 0 : index
    %c0_13 = arith.constant 0 : index
    %13 = vector.load %arg5[%c0_12, %c0_13] : memref<1x128xf32, #tpu.memory_space<vmem>>, vector<1x128xf32>
    %14 = vector.broadcast %13 : vector<1x128xf32> to vector<8x128xf32>
    %15 = arith.addf %12, %14 : vector<8x128xf32>
    %cst_14 = arith.constant 2.000000e+01 : f32
    %16 = vector.broadcast %cst_14 : f32 to vector<8x128xf32>
    %17 = arith.cmpf ogt, %15, %16 : vector<8x128xf32>
    %cst_15 = arith.constant 0.000000e+00 : f32
    %18 = vector.broadcast %cst_15 : f32 to vector<8x128xf32>
    %19 = arith.maximumf %18, %15 : vector<8x128xf32>
    %20 = vector.broadcast %cst_15 : f32 to vector<8x128xf32>
    %21 = arith.subf %20, %15 : vector<8x128xf32>
    %22 = arith.cmpf one, %21, %21 : vector<8x128xf32>
    %23 = vector.broadcast %cst_15 : f32 to vector<8x128xf32>
    %24 = arith.addf %23, %15 : vector<8x128xf32>
    %25 = math.absf %21 : vector<8x128xf32>
    %cst_16 = arith.constant 0.000000e+00 : f32
    %26 = vector.broadcast %cst_16 : f32 to vector<8x128xf32>
    %27 = arith.subf %26, %25 : vector<8x128xf32>
    %28 = math.exp %27 : vector<8x128xf32>
    %29 = math.log1p %28 : vector<8x128xf32>
    %30 = arith.addf %19, %29 : vector<8x128xf32>
    %31 = arith.select %22, %24, %30 : vector<8x128xi1>, vector<8x128xf32>
    %32 = arith.select %17, %15, %31 : vector<8x128xi1>, vector<8x128xf32>
    %33 = tpu.iota {dimensions = array<i32: 1>} : vector<8x128xi32>
    %c4_i32 = arith.constant 4 : i32
    %34 = vector.broadcast %c4_i32 : i32 to vector<8x128xi32>
    %35 = arith.cmpi eq, %33, %34 : vector<8x128xi32>
    %36 = arith.select %35, %32, %15 : vector<8x128xi1>, vector<8x128xf32>
    %c0_17 = arith.constant 0 : index
    %c0_18 = arith.constant 0 : index
    %37 = vector.load %arg6[%c0_17, %c0_18] : memref<8x128xf32, #tpu.memory_space<vmem>>, vector<8x128xf32>
    tpu.vector_store %arg6[%c0_17, %c0_18], %36 {strides = array<i32>} : memref<8x128xf32, #tpu.memory_space<vmem>>, vector<8x128xf32>,
    return
  }
  func.func @transform_0(%arg0: i32) -> (i32, i32, i32) {
    %c0_i32 = arith.constant 0 : i32
    %c0_i32_0 = arith.constant 0 : i32
    %c0_i32_1 = arith.constant 0 : i32
    return %arg0, %c0_i32, %c0_i32_0 : i32, i32, i32
  }
  func.func @transform_1(%arg0: i32) -> (i32, i32) {
    %c0_i32 = arith.constant 0 : i32
    %c0_i32_0 = arith.constant 0 : i32
    %c0_i32_1 = arith.constant 0 : i32
    return %c0_i32, %c0_i32_0 : i32, i32
  }
  func.func @transform_2(%arg0: i32) -> (i32, i32) {
    %c0_i32 = arith.constant 0 : i32
    %c0_i32_0 = arith.constant 0 : i32
    %c0_i32_1 = arith.constant 0 : i32
    return %c0_i32, %c0_i32_0 : i32, i32
  }
  func.func @transform_3(%arg0: i32) -> (i32, i32) {
    %c0_i32 = arith.constant 0 : i32
    %c0_i32_0 = arith.constant 0 : i32
    %c0_i32_1 = arith.constant 0 : i32
    return %c0_i32, %c0_i32_0 : i32, i32
  }
  func.func @transform_4(%arg0: i32) -> (i32, i32) {
    %c0_i32 = arith.constant 0 : i32
    %c0_i32_0 = arith.constant 0 : i32
    %c0_i32_1 = arith.constant 0 : i32
    return %c0_i32, %c0_i32_0 : i32, i32
  }
  func.func @transform_5(%arg0: i32) -> (i32, i32) {
    %c0_i32 = arith.constant 0 : i32
    %c0_i32_0 = arith.constant 0 : i32
    return %arg0, %c0_i32 : i32, i32
  }
}

</mosaic_0001>

<bundles_post_ra>
// kernel: aleatoric_forward.1
= control target key start
LH: loop header
LB: loop body
LE: loop exit
PB: predicated region body
PF: predicated region fallthrough
CT: control target
= control target key end

     0   :  { %vm52_vm0 = vcmask 1043456   ;;  %v466_v40 = vmov 0.0   ;;  %vm467_vm1 = vmmov 0   ;;  %v468_v42 = vmov 0.0|0.0   ;;  %s604_s0 = inlined_call_operand.vmem [shape: f32[8,4,256], index: 0, kind: input, shape index: {}]   ;;  %s605_s1 = inlined_call_operand.vmem [shape: f32[4,128], index: 1, kind: input, shape index: {}]   ;;  %s606_s3 = inlined_call_operand.vmem [shape: f32[128,128], index: 3, kind: input, shape index: {}]   ;;  %s607_s2 = inlined_call_operand.vmem [shape: f32[1,128], index: 2, kind: input, shape index: {}]   ;;  %s608_s4 = inlined_call_operand.vmem [shape: f32[1,128], index: 4, kind: input, shape index: {}]   ;;  %s609_s5 = inlined_call_operand.vmem [shape: f32[8,128], index: 5, kind: output, shape index: {}]  }
   0x1   :  { %v20_v0 = vld [vmem:[%s604_s0] sm:$0xff]  ;;  %v22_v1 = vld [vmem:[%s604_s0 + $0x10] sm:$0xff]  ;;  %v21_v2 = vld [vmem:[%s604_s0 + $0x8] sm:$0xff]  ;;  %387 = vmatprep.subr.mxu0 %v466_v40  ;;  %389 = vmatprep.mubr.msk.f32.mxu0 %vm467_vm1, %v466_v40  ;;  %vm152_vm2 = vcmask 1041409   ;;  %vm154_vm3 = vcmask 1042434   ;;  %vm156_vm4 = vcmask 1043459  }
   0x2   :  { %v36_v3 = vcombine.high %v20_v0, %v20_v0  ;;  %v53_v4 = vsel %vm52_vm0, %v20_v0, 0.0  ;;  %v38_v5 = vcombine.high %v22_v1, %v22_v1  ;;  %v63_v6 = vsel %vm52_vm0, %v22_v1, 0.0  ;;  %v23_v7 = vld [vmem:[%s604_s0 + $0x18] sm:$0xff]  ;;  %v24_v8 = vld [vmem:[%s604_s0 + $0x20] sm:$0xff]  ;;  %v25_v12 = vld [vmem:[%s604_s0 + $0x28] sm:$0xff]  ;;  %424 = vmatprep.mubr.msk.f32.mxu1 %vm467_vm1, %v466_v40  ;;  %427 = vmatprep.subr.bf16.mxu1 %v468_v42 }
   0x3   :  { %v37_v9 = vcombine.high %v21_v2, %v21_v2  ;;  %v58_v10 = vsel %vm52_vm0, %v21_v2, 0.0  ;;  %v39_v11 = vcombine.high %v23_v7, %v23_v7  ;;  %v68_v15 = vsel %vm52_vm0, %v23_v7, 0.0  ;;  %v26_v21 = vld [vmem:[%s604_s0 + $0x30] sm:$0xff]  ;;  %v27_v22 = vld [vmem:[%s604_s0 + $0x38] sm:$0xff]  ;;  %v102_v41 = vld [vmem:[%s605_s1] sm:$0xf] }
   0x4   :  { %v54_v13 = vsel %vm52_vm0, %v36_v3, 0.0  ;;  %v64_v14 = vsel %vm52_vm0, %v38_v5, 0.0  ;;  %v40_v16 = vcombine.high %v24_v8, %v24_v8  ;;  %v41_v23 = vcombine.high %v25_v12, %v25_v12  ;;  %388 = vmatpush3.msk.msra.mxu0 %vm52_vm0, %v102_v41  ;;  %v243_v43 = vld [vmem:[%s606_s3] sm:$0xff]  ;;  %v244_v44 = vld [vmem:[%s606_s3 + $0x8] sm:$0xff]  ;;  %v245_v45 = vld [vmem:[%s606_s3 + $0x10] sm:$0xff] }
   0x5   :  { %v55_v17 = vadd.f32 %v54_v13, %v53_v4  ;;  %v65_v18 = vadd.f32 %v64_v14, %v63_v6  ;;  %v59_v19 = vsel %vm52_vm0, %v37_v9, 0.0  ;;  %v69_v20 = vsel %vm52_vm0, %v39_v11, 0.0  ;;  %v246_v47 = vld [vmem:[%s606_s3 + $0x18] sm:$0xff]  ;;  %v247_v49 = vld [vmem:[%s606_s3 + $0x20] sm:$0xff]  ;;  %v248_v50 = vld [vmem:[%s606_s3 + $0x28] sm:$0xff] }
   0x6   :  { %v60_v24 = vadd.f32 %v59_v19, %v58_v10  ;;  %v70_v25 = vadd.f32 %v69_v20, %v68_v15  ;;  %v73_v26 = vsel %vm52_vm0, %v24_v8, 0.0  ;;  %v74_v27 = vsel %vm52_vm0, %v40_v16, 0.0  ;;  %v249_v52 = vld [vmem:[%s606_s3 + $0x30] sm:$0xff]  ;;  %v250_v53 = vld [vmem:[%s606_s3 + $0x38] sm:$0xff]  ;;  %v251_v55 = vld [vmem:[%s606_s3 + $0x40] sm:$0xff] }
   0x7   :  { %56 = vadd.xlane.f32.xlu0 %v55_v17  ;;  %66 = vadd.xlane.f32.xlu1 %v65_v18  ;;  %v78_v28 = vsel %vm52_vm0, %v25_v12, 0.0  ;;  %v79_v29 = vsel %vm52_vm0, %v41_v23, 0.0  ;;  %v42_v30 = vcombine.high %v26_v21, %v26_v21  ;;  %v43_v31 = vcombine.high %v27_v22, %v27_v22  ;;  %v252_v56 = vld [vmem:[%s606_s3 + $0x48] sm:$0xff]  ;;  %v253_v58 = vld [vmem:[%s606_s3 + $0x50] sm:$0xff]  ;;  %v254_v59 = vld [vmem:[%s606_s3 + $0x58] sm:$0xff] }
   0x8   :  { %v75_v32 = vadd.f32 %v74_v27, %v73_v26  ;;  %v80_v33 = vadd.f32 %v79_v29, %v78_v28  ;;  %v83_v34 = vsel %vm52_vm0, %v26_v21, 0.0  ;;  %v88_v36 = vsel %vm52_vm0, %v27_v22, 0.0  ;;  %v255_v61 = vld [vmem:[%s606_s3 + $0x60] sm:$0xff]  ;;  %v256_v62 = vld [vmem:[%s606_s3 + $0x68] sm:$0xff] }
   0x9   :  { %v84_v35 = vsel %vm52_vm0, %v42_v30, 0.0  ;;  %v89_v37 = vsel %vm52_vm0, %v43_v31, 0.0  ;;  %v428_v46 = vpack.c.bf16 %v244_v44, %v243_v43  ;;  %v431_v48 = vpack.c.bf16 %v246_v47, %v245_v45  ;;  %v367_v43 = vld [vmem:[%s608_s4] ss:$0 sm:$0xff] }
   0xa   :  { %v85_v38 = vadd.f32 %v84_v35, %v83_v34  ;;  %v90_v39 = vadd.f32 %v89_v37, %v88_v36  ;;  %v434_v51 = vpack.c.bf16 %v248_v50, %v247_v49  ;;  %v437_v54 = vpack.c.bf16 %v250_v53, %v249_v52  ;;  %v257_v35 = vld [vmem:[%s606_s3 + $0x70] sm:$0xff]  ;;  %v258_v36 = vld [vmem:[%s606_s3 + $0x78] sm:$0xff] }
   0xb   :  { %61 = vadd.xlane.f32.xlu0 %v60_v24  ;;  %71 = vadd.xlane.f32.xlu1 %v70_v25  ;;  %v440_v57 = vpack.c.bf16 %v252_v56, %v251_v55  ;;  %v443_v60 = vpack.c.bf16 %v254_v59, %v253_v58  ;;  %v446_v63 = vpack.c.bf16 %v256_v62, %v255_v61  ;;  %v118_v0 = vlaneseq }
   0xc   :  { %429 = vmatpush3.bf16.msra.mxu1 %v428_v46  ;;  %vm158_vm5 = vcmask 1044484   ;;  %vm160_vm6 = vcmask 1045509   ;;  %vm162_vm7 = vcmask 1046534   ;;  %vm164_vm8 = vcmask 1047559  }
   0xd   :  { %430 = vmatprep.subr.bf16.mxu1 %v468_v42  ;;  %v585_v1 = vand.u32 127, %v118_v0  ;;  %v121_v2 = vshrl.u32 %v118_v0, 7  ;;  %vm166_vm9 = vcmask 31744   ;;  %v449_v37 = vpack.c.bf16 %v258_v36, %v257_v35 }
   0xf   :  { %76 = vadd.xlane.f32.xlu0 %v75_v32  ;;  %81 = vadd.xlane.f32.xlu1 %v80_v33  ;;  %v122_v5 = vsub.s32 %v585_v1, %v121_v2  ;;  %vm357_vm12 = vcmp.eq.s32.totalorder %v585_v1, 4 }
  0x10   :  { %432 = vmatpush3.bf16.msra.mxu1 %v431_v48 }
  0x11   :  { %433 = vmatprep.subr.bf16.mxu1 %v468_v42 }
  0x13   :  { %86 = vadd.xlane.f32.xlu0 %v85_v38  ;;  %91 = vadd.xlane.f32.xlu1 %v90_v39  ;;  %v364_v38 = vld [vmem:[%s607_s2] ss:$0 sm:$0xff] }
  0x14   :  { %435 = vmatpush3.bf16.msra.mxu1 %v434_v51 }
  0x15   :  { %436 = vmatprep.subr.bf16.mxu1 %v468_v42 }
  0x18   :  { %438 = vmatpush3.bf16.msra.mxu1 %v437_v54 }
  0x19   :  { %439 = vmatprep.subr.bf16.mxu1 %v468_v42 }
  0x1c   :  { %441 = vmatpush3.bf16.msra.mxu1 %v440_v57 }
  0x1d   :  { %442 = vmatprep.subr.bf16.mxu1 %v468_v42 }
  0x20   :  { %444 = vmatpush3.bf16.msra.mxu1 %v443_v60 }
  0x21   :  { %445 = vmatprep.subr.bf16.mxu1 %v468_v42 }
  0x24   :  { %447 = vmatpush3.bf16.msra.mxu1 %v446_v63 }
  0x25   :  { %448 = vmatprep.subr.bf16.mxu1 %v468_v42 }
  0x28   :  { %450 = vmatpush3.bf16.msra.mxu1 %v449_v37 }
  0x94   :  { %v57_v3 = vpop.xlane.xlu0 %56  ;;  %v67_v4 = vpop.xlane.xlu1 %66 }
  0x95   :  { %v94_v6 = vmul.f32 0.00390625, %v57_v3  ;;  %v96_v7 = vmul.f32 0.00390625, %v67_v4 }
  0x97   :  { %v123_v12 = vrot.slane %v94_v6, %v122_v5  ;;  %v131_v15 = vrot.slane %v96_v7, %v122_v5 }
  0x98   :  { %v62_v8 = vpop.xlane.xlu0 %61  ;;  %v72_v9 = vpop.xlane.xlu1 %71 }
  0x99   :  { %v95_v10 = vmul.f32 0.00390625, %v62_v8  ;;  %v97_v11 = vmul.f32 0.00390625, %v72_v9 }
  0x9b   :  { %v127_v13 = vrot.slane %v95_v10, %v122_v5  ;;  %v135_v14 = vrot.slane %v97_v11, %v122_v5 }
  0x9c   :  { %v77_v16 = vpop.xlane.xlu0 %76  ;;  %v82_v17 = vpop.xlane.xlu1 %81 }
  0x9d   :  { %v153_v18 = vsel %vm152_vm2, %v127_v13, %v123_v12  ;;  %v98_v19 = vmul.f32 0.00390625, %v77_v16  ;;  %v99_v20 = vmul.f32 0.00390625, %v82_v17 }
  0x9e   :  { %v155_v21 = vsel %vm154_vm3, %v131_v15, %v153_v18 }
  0x9f   :  { %v157_v22 = vsel %vm156_vm4, %v135_v14, %v155_v21  ;;  %v139_v23 = vrot.slane %v98_v19, %v122_v5  ;;  %v143_v24 = vrot.slane %v99_v20, %v122_v5 }
  0xa0   :  { %v87_v25 = vpop.xlane.xlu0 %86  ;;  %v92_v26 = vpop.xlane.xlu1 %91 }
  0xa1   :  { %v159_v27 = vsel %vm158_vm5, %v139_v23, %v157_v22  ;;  %v100_v28 = vmul.f32 0.00390625, %v87_v25  ;;  %v101_v29 = vmul.f32 0.00390625, %v92_v26 }
  0xa2   :  { %v161_v32 = vsel %vm160_vm6, %v143_v24, %v159_v27 }
  0xa3   :  { %v147_v30 = vrot.slane %v100_v28, %v122_v5  ;;  %v151_v31 = vrot.slane %v101_v29, %v122_v5 }
  0xa5   :  { %v163_v33 = vsel %vm162_vm7, %v147_v30, %v161_v32 }
  0xa6   :  { %v165_v34 = vsel %vm164_vm8, %v151_v31, %v163_v33 }
  0xa7   :  { %390 = vmatmul.mubr.msk.f32.vlgmr.msra.gmra.mrb[0].mxu0 %vm166_vm9, %v165_v34 }
 0x17a   :  { %v238_v39 = vpop.f32.mrb[0].mxu0 }
 0x17b   :  { %v239_v40 = vadd.f32 %v364_v38, %v238_v39  ;;  %v391_v41 = vpop.f32.mrb[1].mxu0 }
 0x17d   :  { %v242_v42 = vmax.f32 %v239_v40, 0.0 }
 0x17f   :  { %425 = vmatmul.mubr.f32.vlgmr.msra.gmra.mrb[0].mxu1 %v242_v42 }
 0x252   :  { %v332_v44 = vpop.f32.mrb[0].mxu1 }
 0x253   :  { %v333_v45 = vadd.f32 %v367_v43, %v332_v44  ;;  %v426_v46 = vpop.f32.mrb[1].mxu1 }
 0x255   :  { %v338_v47 = vsub.f32 0.0, %v333_v45  ;;  %v337_v59 = vmax.f32 %v333_v45, 0.0  ;;  %vm336_vm13 = vcmp.gt.f32.partialorder %v333_v45, 20.0 }
 0x257   :  { %v341_v48 = vand.u32 2147483647, %v338_v47  ;;  %vm339_vm11 = vcmp.ne.f32.partialorder %v338_v47, %v338_v47 }
 0x259   :  { %v342_v49 = vsub.f32 0.0, %v341_v48 }
 0x25b   :  { %v343_v50 = vmul.f32 1.442695, %v342_v49 }
 0x25d   :  { %462 = vpow2.f32 %v343_v50 }
 0x267   :  { %v463_v51 = vpop.eup %462 }
 0x268   :  { %v345_v52 = vadd.f32 1.0, %v463_v51  ;;  %v348_v53 = vmul.f32 -0.5, %v463_v51  ;;  %v351_v55 = vand.u32 2147483647, %v463_v51 }
 0x26a   :  { %464 = vlog2.f32 %v345_v52  ;;  %v349_v54 = vadd.f32 1.0, %v348_v53  ;;  %vm352_vm10 = vcmp.lt.f32.partialorder %v351_v55, 0.0004427343 }
 0x26c   :  { %v350_v58 = vmul.f32 %v463_v51, %v349_v54 }
 0x274   :  { %v465_v56 = vpop.eup %464 }
 0x275   :  { %v347_v57 = vmul.f32 0.6931472, %v465_v56 }
 0x277   :  { %v353_v60 = vsel %vm352_vm10, %v350_v58, %v347_v57 }
 0x278   :  { %v354_v61 = vadd.f32 %v353_v60, %v337_v59 }
 0x27a   :  { %v355_v62 = vsel %vm339_vm11, %v333_v45, %v354_v61 }
 0x27b   :  { %v356_v63 = vsel %vm336_vm13, %v333_v45, %v355_v62 }
 0x27c   :  { %v358_v0 = vsel %vm357_vm12, %v356_v63, %v333_v45 }
 0x27d   :  { %359 = vst [vmem:[%s609_s5] sm:$0xff] %v358_v0 }

</bundles_post_ra>
